<compile_context>
chip_gen: v5e
topology: v5e:2x2
jax: 0.10.0
libtpu: 0.0.40
codegen_flags: <defaults>
</compile_context>

<pallas_src>
import math

import jax
import jax.numpy as jnp
from jax.experimental import pallas as pl
from jax.experimental.pallas import tpu as pltpu  # noqa: F401  (TPU backend)

# ----------------------------- model config ---------------------------------
BATCH = 2
MAX_LENGTH = 8          # self.max_length / padding='max_length'
HIDDEN = 32
NUM_HEADS = 2
HEAD_DIM = HIDDEN // NUM_HEADS
FFN = 64
VOCAB = 128
M = BATCH * MAX_LENGTH          # 16 token positions
R = NUM_HEADS * M               # 32 rows in block-diagonal head layout
LN_EPS = 1e-12                  # match the f32 reference epsilon
LANES = 128

# --- bf16 weight-slab row offsets (all 16-row aligned, lane offset 0) --------
R_TOK = 0                       # [VOCAB, HIDDEN]
R_WQ = 128                      # [HIDDEN, HIDDEN]  (1/sqrt(Dh) folded in)
R_WK = 160
R_WV = 192
R_WO = 224
R_W1 = 256                      # [HIDDEN, FFN]
R_W2 = 288                      # [FFN, HIDDEN]
W_ROWS = 352

# --- f32-slab row offsets -----------------------------------------------------
R_POS = 0                       # [M, HIDDEN]  pos_emb pre-tiled over batch
R_LN0G, R_LN0B = 16, 17
R_BQ, R_BK, R_BV, R_BO = 18, 19, 20, 21
R_LN1G, R_LN1B = 22, 23
R_B1, R_B2 = 24, 25
R_LN2G, R_LN2B = 26, 27
R_HMASK = 32                    # [R, HIDDEN] per-head column mask (0/1)
R_BBIAS = 64                    # [R, R] block-diagonal additive bias (0/-1e9)
F_ROWS = 96


# ------------------------------ helpers --------------------------------------
def _full_spec(shape):
    ndim = len(shape)
    return pl.BlockSpec(shape, lambda: (0,) * ndim)


def _layernorm(x, g, b):
    mu = jnp.mean(x, axis=-1, keepdims=True)
    var = jnp.mean((x - mu) ** 2, axis=-1, keepdims=True)
    return (x - mu) * jax.lax.rsqrt(var + LN_EPS) * g + b


def _erf(x):
    # Abramowitz & Stegun 7.1.26 (|err| < 1.5e-7): exact-GELU erf built only
    # from exp/mul/add/div/where, so it is guaranteed to lower in Mosaic.
    a1, a2, a3 = 0.254829592, -0.284496736, 1.421413741
    a4, a5 = -1.453152027, 1.061405429
    p = 0.3275911
    ax = jnp.abs(x)
    t = 1.0 / (1.0 + p * ax)
    poly = ((((a5 * t + a4) * t + a3) * t + a2) * t + a1) * t
    y = 1.0 - poly * jnp.exp(-ax * ax)
    return jnp.where(x >= 0.0, y, -y)


def _gelu_exact(x):
    return 0.5 * x * (1.0 + _erf(x * 0.7071067811865476))


# --------------------------- fused encoder kernel -----------------------------
def _encoder_kernel(ids_ref, kbias_ref, w_ref, f_ref, o_ref):
    f32 = jnp.float32
    bf16 = jnp.bfloat16

    # ---- unpack bf16 weight slab (sublane-aligned blocks, lane offset 0) -----
    tok_emb = w_ref[R_TOK:R_TOK + VOCAB, 0:HIDDEN]
    wq = w_ref[R_WQ:R_WQ + HIDDEN, 0:HIDDEN]
    wk = w_ref[R_WK:R_WK + HIDDEN, 0:HIDDEN]
    wv = w_ref[R_WV:R_WV + HIDDEN, 0:HIDDEN]
    wo = w_ref[R_WO:R_WO + HIDDEN, 0:HIDDEN]
    w1 = w_ref[R_W1:R_W1 + HIDDEN, 0:FFN]
    w2 = w_ref[R_W2:R_W2 + FFN, 0:HIDDEN]

    # ---- unpack f32 slab ------------------------------------------------------
    pos = f_ref[R_POS:R_POS + M, 0:HIDDEN]
    ln0_g = f_ref[R_LN0G:R_LN0G + 1, 0:HIDDEN]
    ln0_b = f_ref[R_LN0B:R_LN0B + 1, 0:HIDDEN]
    bq = f_ref[R_BQ:R_BQ + 1, 0:HIDDEN]
    bk = f_ref[R_BK:R_BK + 1, 0:HIDDEN]
    bv = f_ref[R_BV:R_BV + 1, 0:HIDDEN]
    bo = f_ref[R_BO:R_BO + 1, 0:HIDDEN]
    ln1_g = f_ref[R_LN1G:R_LN1G + 1, 0:HIDDEN]
    ln1_b = f_ref[R_LN1B:R_LN1B + 1, 0:HIDDEN]
    b1 = f_ref[R_B1:R_B1 + 1, 0:FFN]
    b2 = f_ref[R_B2:R_B2 + 1, 0:HIDDEN]
    ln2_g = f_ref[R_LN2G:R_LN2G + 1, 0:HIDDEN]
    ln2_b = f_ref[R_LN2B:R_LN2B + 1, 0:HIDDEN]
    hmask = f_ref[R_HMASK:R_HMASK + R, 0:HIDDEN]
    bbias = f_ref[R_BBIAS:R_BBIAS + R, 0:R]

    # ---- embedding: one-hot (VOCAB=128 lanes) MXU gather + positional --------
    ids = jnp.clip(ids_ref[...], 0, VOCAB - 1)                      # [M, 1]
    iota_v = jax.lax.broadcasted_iota(jnp.int32, (M, VOCAB), 1)
    onehot = (iota_v == ids).astype(bf16)                           # [M, 128]
    emb = jnp.dot(onehot, tok_emb, preferred_element_type=f32) + pos

    x = _layernorm(emb, ln0_g, ln0_b)                               # [M, H] f32

    # ---- QKV projections directly in block-diagonal head layout --------------
    # rows ordered (head, batch, seq):  r = h*M + b*S + s
    x2 = jnp.concatenate([x, x], axis=0).astype(bf16)               # [R, H]
    q = jnp.dot(x2, wq, preferred_element_type=f32) + bq            # scale pre-folded
    k = jnp.dot(x2, wk, preferred_element_type=f32) + bk
    v = jnp.dot(x2, wv, preferred_element_type=f32) + bv
    q = q * hmask        # keep only this row's head columns of Q

    # ---- one block-diagonal attention: 1 score matmul + 1 PV matmul ----------
    s = jax.lax.dot_general(q.astype(bf16), k.astype(bf16),
                            (((1,), (1,)), ((), ())),
                            preferred_element_type=f32)             # [R, R]
    s = s + bbias + kbias_ref[...]              # block-diag + key-padding bias
    s = s - jnp.max(s, axis=-1, keepdims=True)
    p = jnp.exp(s)
    p = p / jnp.sum(p, axis=-1, keepdims=True)                      # exact softmax
    ctx = jnp.dot(p.astype(bf16), v.astype(bf16),
                  preferred_element_type=f32)                       # [R, H]
    ctx = ctx * hmask                     # zero the other head's columns
    attn = ctx[0:M, :] + ctx[M:R, :]      # merge heads: sublane-aligned add

    attn_out = jnp.dot(attn.astype(bf16), wo, preferred_element_type=f32) + bo
    x = _layernorm(attn_out + x, ln1_g, ln1_b)

    # ---- feed-forward with exact (erf) GELU -----------------------------------
    h = jnp.dot(x.astype(bf16), w1, preferred_element_type=f32) + b1
    h = _gelu_exact(h)
    ffn = jnp.dot(h.astype(bf16), w2, preferred_element_type=f32) + b2
    o_ref[...] = _layernorm(ffn + x, ln2_g, ln2_b)


# ------------------------------ parameters -----------------------------------
def init_params():
    """Builds the two pre-packed slabs (done once; nothing per-call)."""
    keys = jax.random.split(jax.random.PRNGKey(42), 8)
    std = 0.02
    f32 = jnp.float32
    tok_emb = std * jax.random.normal(keys[0], (VOCAB, HIDDEN), f32)
    pos_emb = std * jax.random.normal(keys[1], (MAX_LENGTH, HIDDEN), f32)
    wq = std * jax.random.normal(keys[2], (HIDDEN, HIDDEN), f32)
    wk = std * jax.random.normal(keys[3], (HIDDEN, HIDDEN), f32)
    wv = std * jax.random.normal(keys[4], (HIDDEN, HIDDEN), f32)
    wo = std * jax.random.normal(keys[5], (HIDDEN, HIDDEN), f32)
    w1 = std * jax.random.normal(keys[6], (HIDDEN, FFN), f32)
    w2 = std * jax.random.normal(keys[7], (FFN, HIDDEN), f32)
    bq = jnp.zeros((HIDDEN,), f32)
    bk = jnp.zeros((HIDDEN,), f32)
    bv = jnp.zeros((HIDDEN,), f32)
    bo = jnp.zeros((HIDDEN,), f32)
    b1 = jnp.zeros((FFN,), f32)
    b2 = jnp.zeros((HIDDEN,), f32)
    scale = 1.0 / math.sqrt(HEAD_DIM)

    # ---- bf16 weight slab -----------------------------------------------------
    wslab = jnp.zeros((W_ROWS, LANES), f32)
    wslab = wslab.at[R_TOK:R_TOK + VOCAB, 0:HIDDEN].set(tok_emb)
    wslab = wslab.at[R_WQ:R_WQ + HIDDEN, 0:HIDDEN].set(wq * scale)
    wslab = wslab.at[R_WK:R_WK + HIDDEN, 0:HIDDEN].set(wk)
    wslab = wslab.at[R_WV:R_WV + HIDDEN, 0:HIDDEN].set(wv)
    wslab = wslab.at[R_WO:R_WO + HIDDEN, 0:HIDDEN].set(wo)
    wslab = wslab.at[R_W1:R_W1 + HIDDEN, 0:FFN].set(w1)
    wslab = wslab.at[R_W2:R_W2 + FFN, 0:HIDDEN].set(w2)
    wslab = wslab.astype(jnp.bfloat16)

    # ---- f32 slab: pos (pre-tiled), LN params, biases, attention constants ----
    fslab = jnp.zeros((F_ROWS, LANES), f32)
    fslab = fslab.at[R_POS:R_POS + M, 0:HIDDEN].set(jnp.tile(pos_emb, (BATCH, 1)))
    ones_h = jnp.ones((HIDDEN,), f32)
    zeros_h = jnp.zeros((HIDDEN,), f32)
    fslab = fslab.at[R_LN0G, 0:HIDDEN].set(ones_h)
    fslab = fslab.at[R_LN0B, 0:HIDDEN].set(zeros_h)
    fslab = fslab.at[R_BQ, 0:HIDDEN].set(bq * scale)
    fslab = fslab.at[R_BK, 0:HIDDEN].set(bk)
    fslab = fslab.at[R_BV, 0:HIDDEN].set(bv)
    fslab = fslab.at[R_BO, 0:HIDDEN].set(bo)
    fslab = fslab.at[R_LN1G, 0:HIDDEN].set(ones_h)
    fslab = fslab.at[R_LN1B, 0:HIDDEN].set(zeros_h)
    fslab = fslab.at[R_B1, 0:FFN].set(b1)
    fslab = fslab.at[R_B2, 0:HIDDEN].set(b2)
    fslab = fslab.at[R_LN2G, 0:HIDDEN].set(ones_h)
    fslab = fslab.at[R_LN2B, 0:HIDDEN].set(zeros_h)

    rows = jnp.arange(R)
    cols = jnp.arange(HIDDEN)
    # row r belongs to head r//M; it owns output columns (r//M)*HEAD_DIM : +HEAD_DIM
    hmask = (rows[:, None] // M == cols[None, :] // HEAD_DIM).astype(f32)
    grp = rows // MAX_LENGTH                       # group id = head*BATCH + batch
    bbias = jnp.where(grp[:, None] == grp[None, :], 0.0, -1e9).astype(f32)
    fslab = fslab.at[R_HMASK:R_HMASK + R, 0:HIDDEN].set(hmask)
    fslab = fslab.at[R_BBIAS:R_BBIAS + R, 0:R].set(bbias)

    return {"wslab": wslab, "fslab": fslab}


# ------------------------------ forward pass ----------------------------------
@jax.jit
def base_model_forward(params, input_ids, attention_mask):
    """input_ids: int32 [B, S]; attention_mask: [B, S] (1 = real token).

    Returns last_hidden_state [B, S, H] (the `output_embedding` of the module).
    """
    b, s = input_ids.shape
    m = b * s
    ids2 = input_ids.reshape(m, 1).astype(jnp.int32)
    # Additive key-padding bias laid out in the kernel's (head, batch, seq)
    # key order; the cast/reshape/tile fuse into one tiny XLA fusion.
    kb = (attention_mask.astype(jnp.float32).reshape(1, m) - 1.0) * 1e9
    kbias = jnp.tile(kb, (1, NUM_HEADS))                          # [1, R]

    out = pl.pallas_call(
        _encoder_kernel,
        out_shape=jax.ShapeDtypeStruct((m, HIDDEN), jnp.float32),
        in_specs=[
            _full_spec((m, 1)),
            _full_spec((1, NUM_HEADS * m)),
            _full_spec((W_ROWS, LANES)),
            _full_spec((F_ROWS, LANES)),
        ],
        out_specs=_full_spec((m, HIDDEN)),
    )(ids2, kbias, params["wslab"], params["fslab"])
    return out.reshape(b, s, HIDDEN)


# --------------------------------- main ---------------------------------------
if __name__ == "__main__":
    # TODO(synk): the HuggingFace tokenizer (string -> ids) and pretrained
    # weight loading are host-side / network operations with no Pallas
    # equivalent; start from deterministic synthetic token ids and weights.
    key = jax.random.PRNGKey(0)
    input_ids = jax.random.randint(key, (BATCH, MAX_LENGTH), 0, VOCAB, jnp.int32)
    attention_mask = jnp.ones((BATCH, MAX_LENGTH), jnp.int32)

    params = init_params()
    out = base_model_forward(params, input_ids, attention_mask)
    jax.block_until_ready(out)

    assert out.shape == (BATCH, MAX_LENGTH, HIDDEN)
    assert bool(jnp.all(jnp.isfinite(out)))
    print("KERNEL_OK")
</pallas_src>

<mosaic_0001>
module attributes {stable_mosaic.version = 11 : i64} {
  func.func @_encoder_kernel(%arg0: memref<16x1xi32, #tpu.memory_space<vmem>>, %arg1: memref<1x32xf32, #tpu.memory_space<vmem>>, %arg2: memref<352x128xbf16, #tpu.memory_space<vmem>>, %arg3: memref<96x128xf32, #tpu.memory_space<vmem>>, %arg4: memref<16x32xf32, #tpu.memory_space<vmem>>) attributes {dimension_semantics = [], scalar_prefetch = 0 : i64, scratch_operands = 0 : i64, tpu.core_type = #tpu.core_type<tc>} {
    %c0 = arith.constant 0 : index
    %c0_0 = arith.constant 0 : index
    %0 = vector.load %arg2[%c0, %c0_0] : memref<352x128xbf16, #tpu.memory_space<vmem>>, vector<128x32xbf16>
    %c128 = arith.constant 128 : index
    %c0_1 = arith.constant 0 : index
    %1 = vector.load %arg2[%c128, %c0_1] : memref<352x128xbf16, #tpu.memory_space<vmem>>, vector<32x32xbf16>
    %c160 = arith.constant 160 : index
    %c0_2 = arith.constant 0 : index
    %2 = vector.load %arg2[%c160, %c0_2] : memref<352x128xbf16, #tpu.memory_space<vmem>>, vector<32x32xbf16>
    %c192 = arith.constant 192 : index
    %c0_3 = arith.constant 0 : index
    %3 = vector.load %arg2[%c192, %c0_3] : memref<352x128xbf16, #tpu.memory_space<vmem>>, vector<32x32xbf16>
    %c224 = arith.constant 224 : index
    %c0_4 = arith.constant 0 : index
    %4 = vector.load %arg2[%c224, %c0_4] : memref<352x128xbf16, #tpu.memory_space<vmem>>, vector<32x32xbf16>
    %c256 = arith.constant 256 : index
    %c0_5 = arith.constant 0 : index
    %5 = vector.load %arg2[%c256, %c0_5] : memref<352x128xbf16, #tpu.memory_space<vmem>>, vector<32x64xbf16>
    %c288 = arith.constant 288 : index
    %c0_6 = arith.constant 0 : index
    %6 = vector.load %arg2[%c288, %c0_6] : memref<352x128xbf16, #tpu.memory_space<vmem>>, vector<64x32xbf16>
    %c0_7 = arith.constant 0 : index
    %c0_8 = arith.constant 0 : index
    %7 = vector.load %arg3[%c0_7, %c0_8] : memref<96x128xf32, #tpu.memory_space<vmem>>, vector<16x32xf32>
    %c16 = arith.constant 16 : index
    %c0_9 = arith.constant 0 : index
    %8 = vector.load %arg3[%c16, %c0_9] : memref<96x128xf32, #tpu.memory_space<vmem>>, vector<1x32xf32>
    %c17 = arith.constant 17 : index
    %c0_10 = arith.constant 0 : index
    %9 = vector.load %arg3[%c17, %c0_10] : memref<96x128xf32, #tpu.memory_space<vmem>>, vector<1x32xf32>
    %c18 = arith.constant 18 : index
    %c0_11 = arith.constant 0 : index
    %10 = vector.load %arg3[%c18, %c0_11] : memref<96x128xf32, #tpu.memory_space<vmem>>, vector<1x32xf32>
    %c19 = arith.constant 19 : index
    %c0_12 = arith.constant 0 : index
    %11 = vector.load %arg3[%c19, %c0_12] : memref<96x128xf32, #tpu.memory_space<vmem>>, vector<1x32xf32>
    %c20 = arith.constant 20 : index
    %c0_13 = arith.constant 0 : index
    %12 = vector.load %arg3[%c20, %c0_13] : memref<96x128xf32, #tpu.memory_space<vmem>>, vector<1x32xf32>
    %c21 = arith.constant 21 : index
    %c0_14 = arith.constant 0 : index
    %13 = vector.load %arg3[%c21, %c0_14] : memref<96x128xf32, #tpu.memory_space<vmem>>, vector<1x32xf32>
    %c22 = arith.constant 22 : index
    %c0_15 = arith.constant 0 : index
    %14 = vector.load %arg3[%c22, %c0_15] : memref<96x128xf32, #tpu.memory_space<vmem>>, vector<1x32xf32>
    %c23 = arith.constant 23 : index
    %c0_16 = arith.constant 0 : index
    %15 = vector.load %arg3[%c23, %c0_16] : memref<96x128xf32, #tpu.memory_space<vmem>>, vector<1x32xf32>
    %c24 = arith.constant 24 : index
    %c0_17 = arith.constant 0 : index
    %16 = vector.load %arg3[%c24, %c0_17] : memref<96x128xf32, #tpu.memory_space<vmem>>, vector<1x64xf32>
    %c25 = arith.constant 25 : index
    %c0_18 = arith.constant 0 : index
    %17 = vector.load %arg3[%c25, %c0_18] : memref<96x128xf32, #tpu.memory_space<vmem>>, vector<1x32xf32>
    %c26 = arith.constant 26 : index
    %c0_19 = arith.constant 0 : index
    %18 = vector.load %arg3[%c26, %c0_19] : memref<96x128xf32, #tpu.memory_space<vmem>>, vector<1x32xf32>
    %c27 = arith.constant 27 : index
    %c0_20 = arith.constant 0 : index
    %19 = vector.load %arg3[%c27, %c0_20] : memref<96x128xf32, #tpu.memory_space<vmem>>, vector<1x32xf32>
    %c32 = arith.constant 32 : index
    %c0_21 = arith.constant 0 : index
    %20 = vector.load %arg3[%c32, %c0_21] : memref<96x128xf32, #tpu.memory_space<vmem>>, vector<32x32xf32>
    %c64 = arith.constant 64 : index
    %c0_22 = arith.constant 0 : index
    %21 = vector.load %arg3[%c64, %c0_22] : memref<96x128xf32, #tpu.memory_space<vmem>>, vector<32x32xf32>
    %c0_23 = arith.constant 0 : index
    %c0_24 = arith.constant 0 : index
    %22 = vector.load %arg0[%c0_23, %c0_24] : memref<16x1xi32, #tpu.memory_space<vmem>>, vector<16x1xi32>
    %c0_i32 = arith.constant 0 : i32
    %c127_i32 = arith.constant 127 : i32
    %23 = vector.broadcast %c0_i32 : i32 to vector<16x1xi32>
    %24 = arith.maxsi %23, %22 : vector<16x1xi32>
    %25 = vector.broadcast %c127_i32 : i32 to vector<16x1xi32>
    %26 = arith.minsi %25, %24 : vector<16x1xi32>
    %27 = tpu.iota {dimensions = array<i32: 1>} : vector<16x128xi32>
    %28 = vector.broadcast %26 : vector<16x1xi32> to vector<16x128xi32>
    %29 = arith.cmpi eq, %27, %28 : vector<16x128xi32>
    %30 = arith.extui %29 : vector<16x128xi1> to vector<16x128xi32>
    %31 = arith.sitofp %30 : vector<16x128xi32> to vector<16x128xf32>
    %32 = arith.truncf %31 : vector<16x128xf32> to vector<16x128xbf16>
    %cst = arith.constant dense<0.000000e+00> : vector<16x32xf32>
    %33 = tpu.matmul %32, %0, %cst {dimension_numbers = #tpu.dot_dimension_numbers<[1], [0], [0], [1], [0, 0, 1, 1], [], []>} : vector<16x128xbf16>, vector<128x32xbf16>, vector<16x32xf32> -> vector<16x32xf32>
    %34 = arith.addf %33, %7 : vector<16x32xf32>
    %cst_25 = arith.constant dense<0.000000e+00> : vector<16xf32>
    %35 = vector.multi_reduction <add>, %34, %cst_25 [1] : vector<16x32xf32> to vector<16xf32>
    %36 = vector.shape_cast %35 : vector<16xf32> to vector<16x1xf32>
    %cst_26 = arith.constant 3.200000e+01 : f32
    %37 = vector.broadcast %cst_26 : f32 to vector<16x1xf32>
    %38 = arith.divf %36, %37 : vector<16x1xf32>
    %39 = vector.broadcast %38 : vector<16x1xf32> to vector<16x32xf32>
    %40 = arith.subf %34, %39 : vector<16x32xf32>
    %41 = arith.mulf %40, %40 : vector<16x32xf32>
    %cst_27 = arith.constant dense<0.000000e+00> : vector<16xf32>
    %42 = vector.multi_reduction <add>, %41, %cst_27 [1] : vector<16x32xf32> to vector<16xf32>
    %43 = vector.shape_cast %42 : vector<16xf32> to vector<16x1xf32>
    %cst_28 = arith.constant 3.200000e+01 : f32
    %44 = vector.broadcast %cst_28 : f32 to vector<16x1xf32>
    %45 = arith.divf %43, %44 : vector<16x1xf32>
    %46 = vector.broadcast %38 : vector<16x1xf32> to vector<16x32xf32>
    %47 = arith.subf %34, %46 : vector<16x32xf32>
    %cst_29 = arith.constant 9.99999996E-13 : f32
    %48 = vector.broadcast %cst_29 : f32 to vector<16x1xf32>
    %49 = arith.addf %45, %48 : vector<16x1xf32>
    %50 = math.rsqrt %49 : vector<16x1xf32>
    %51 = vector.broadcast %50 : vector<16x1xf32> to vector<16x32xf32>
    %52 = arith.mulf %47, %51 : vector<16x32xf32>
    %53 = vector.broadcast %8 : vector<1x32xf32> to vector<16x32xf32>
    %54 = arith.mulf %52, %53 : vector<16x32xf32>
    %55 = vector.broadcast %9 : vector<1x32xf32> to vector<16x32xf32>
    %56 = arith.addf %54, %55 : vector<16x32xf32>
    %57 = tpu.concatenate %56, %56 in 0 : vector<16x32xf32>, vector<16x32xf32> -> vector<32x32xf32>
    %58 = arith.truncf %57 : vector<32x32xf32> to vector<32x32xbf16>
    %cst_30 = arith.constant dense<0.000000e+00> : vector<32x32xf32>
    %59 = tpu.matmul %58, %1, %cst_30 {dimension_numbers = #tpu.dot_dimension_numbers<[1], [0], [0], [1], [0, 0, 1, 1], [], []>} : vector<32x32xbf16>, vector<32x32xbf16>, vector<32x32xf32> -> vector<32x32xf32>
    %60 = vector.broadcast %10 : vector<1x32xf32> to vector<32x32xf32>
    %61 = arith.addf %59, %60 : vector<32x32xf32>
    %cst_31 = arith.constant dense<0.000000e+00> : vector<32x32xf32>
    %62 = tpu.matmul %58, %2, %cst_31 {dimension_numbers = #tpu.dot_dimension_numbers<[1], [0], [0], [1], [0, 0, 1, 1], [], []>} : vector<32x32xbf16>, vector<32x32xbf16>, vector<32x32xf32> -> vector<32x32xf32>
    %63 = vector.broadcast %11 : vector<1x32xf32> to vector<32x32xf32>
    %64 = arith.addf %62, %63 : vector<32x32xf32>
    %cst_32 = arith.constant dense<0.000000e+00> : vector<32x32xf32>
    %65 = tpu.matmul %58, %3, %cst_32 {dimension_numbers = #tpu.dot_dimension_numbers<[1], [0], [0], [1], [0, 0, 1, 1], [], []>} : vector<32x32xbf16>, vector<32x32xbf16>, vector<32x32xf32> -> vector<32x32xf32>
    %66 = vector.broadcast %12 : vector<1x32xf32> to vector<32x32xf32>
    %67 = arith.addf %65, %66 : vector<32x32xf32>
    %68 = arith.mulf %61, %20 : vector<32x32xf32>
    %69 = arith.truncf %68 : vector<32x32xf32> to vector<32x32xbf16>
    %70 = arith.truncf %64 : vector<32x32xf32> to vector<32x32xbf16>
    %cst_33 = arith.constant dense<0.000000e+00> : vector<32x32xf32>
    %71 = tpu.matmul %69, %70, %cst_33 {dimension_numbers = #tpu.dot_dimension_numbers<[1], [1], [0], [0], [0, 0, 1, 0], [], []>} : vector<32x32xbf16>, vector<32x32xbf16>, vector<32x32xf32> -> vector<32x32xf32>
    %72 = arith.addf %71, %21 : vector<32x32xf32>
    %c0_34 = arith.constant 0 : index
    %c0_35 = arith.constant 0 : index
    %73 = vector.load %arg1[%c0_34, %c0_35] : memref<1x32xf32, #tpu.memory_space<vmem>>, vector<1x32xf32>
    %74 = vector.broadcast %73 : vector<1x32xf32> to vector<32x32xf32>
    %75 = arith.addf %72, %74 : vector<32x32xf32>
    %cst_36 = arith.constant dense<0xFF800000> : vector<32xf32>
    %76 = vector.multi_reduction <maximumf>, %75, %cst_36 [1] : vector<32x32xf32> to vector<32xf32>
    %77 = vector.shape_cast %76 : vector<32xf32> to vector<32x1xf32>
    %78 = vector.broadcast %77 : vector<32x1xf32> to vector<32x32xf32>
    %79 = arith.subf %75, %78 : vector<32x32xf32>
    %80 = math.exp %79 : vector<32x32xf32>
    %cst_37 = arith.constant dense<0.000000e+00> : vector<32xf32>
    %81 = vector.multi_reduction <add>, %80, %cst_37 [1] : vector<32x32xf32> to vector<32xf32>
    %82 = vector.shape_cast %81 : vector<32xf32> to vector<32x1xf32>
    %83 = vector.broadcast %82 : vector<32x1xf32> to vector<32x32xf32>
    %84 = arith.divf %80, %83 : vector<32x32xf32>
    %85 = arith.truncf %84 : vector<32x32xf32> to vector<32x32xbf16>
    %86 = arith.truncf %67 : vector<32x32xf32> to vector<32x32xbf16>
    %cst_38 = arith.constant dense<0.000000e+00> : vector<32x32xf32>
    %87 = tpu.matmul %85, %86, %cst_38 {dimension_numbers = #tpu.dot_dimension_numbers<[1], [0], [0], [1], [0, 0, 1, 1], [], []>} : vector<32x32xbf16>, vector<32x32xbf16>, vector<32x32xf32> -> vector<32x32xf32>
    %88 = arith.mulf %87, %20 : vector<32x32xf32>
    %89 = vector.extract_strided_slice %88 {offsets = [0, 0], sizes = [16, 32], strides = [1, 1]} : vector<32x32xf32> to vector<16x32xf32>
    %90 = vector.extract_strided_slice %88 {offsets = [16, 0], sizes = [16, 32], strides = [1, 1]} : vector<32x32xf32> to vector<16x32xf32>
    %91 = arith.addf %89, %90 : vector<16x32xf32>
    %92 = arith.truncf %91 : vector<16x32xf32> to vector<16x32xbf16>
    %cst_39 = arith.constant dense<0.000000e+00> : vector<16x32xf32>
    %93 = tpu.matmul %92, %4, %cst_39 {dimension_numbers = #tpu.dot_dimension_numbers<[1], [0], [0], [1], [0, 0, 1, 1], [], []>} : vector<16x32xbf16>, vector<32x32xbf16>, vector<16x32xf32> -> vector<16x32xf32>
    %94 = vector.broadcast %13 : vector<1x32xf32> to vector<16x32xf32>
    %95 = arith.addf %93, %94 : vector<16x32xf32>
    %96 = arith.addf %95, %56 : vector<16x32xf32>
    %cst_40 = arith.constant dense<0.000000e+00> : vector<16xf32>
    %97 = vector.multi_reduction <add>, %96, %cst_40 [1] : vector<16x32xf32> to vector<16xf32>
    %98 = vector.shape_cast %97 : vector<16xf32> to vector<16x1xf32>
    %cst_41 = arith.constant 3.200000e+01 : f32
    %99 = vector.broadcast %cst_41 : f32 to vector<16x1xf32>
    %100 = arith.divf %98, %99 : vector<16x1xf32>
    %101 = vector.broadcast %100 : vector<16x1xf32> to vector<16x32xf32>
    %102 = arith.subf %96, %101 : vector<16x32xf32>
    %103 = arith.mulf %102, %102 : vector<16x32xf32>
    %cst_42 = arith.constant dense<0.000000e+00> : vector<16xf32>
    %104 = vector.multi_reduction <add>, %103, %cst_42 [1] : vector<16x32xf32> to vector<16xf32>
    %105 = vector.shape_cast %104 : vector<16xf32> to vector<16x1xf32>
    %cst_43 = arith.constant 3.200000e+01 : f32
    %106 = vector.broadcast %cst_43 : f32 to vector<16x1xf32>
    %107 = arith.divf %105, %106 : vector<16x1xf32>
    %108 = vector.broadcast %100 : vector<16x1xf32> to vector<16x32xf32>
    %109 = arith.subf %96, %108 : vector<16x32xf32>
    %cst_44 = arith.constant 9.99999996E-13 : f32
    %110 = vector.broadcast %cst_44 : f32 to vector<16x1xf32>
    %111 = arith.addf %107, %110 : vector<16x1xf32>
    %112 = math.rsqrt %111 : vector<16x1xf32>
    %113 = vector.broadcast %112 : vector<16x1xf32> to vector<16x32xf32>
    %114 = arith.mulf %109, %113 : vector<16x32xf32>
    %115 = vector.broadcast %14 : vector<1x32xf32> to vector<16x32xf32>
    %116 = arith.mulf %114, %115 : vector<16x32xf32>
    %117 = vector.broadcast %15 : vector<1x32xf32> to vector<16x32xf32>
    %118 = arith.addf %116, %117 : vector<16x32xf32>
    %119 = arith.truncf %118 : vector<16x32xf32> to vector<16x32xbf16>
    %cst_45 = arith.constant dense<0.000000e+00> : vector<16x64xf32>
    %120 = tpu.matmul %119, %5, %cst_45 {dimension_numbers = #tpu.dot_dimension_numbers<[1], [0], [0], [1], [0, 0, 1, 1], [], []>} : vector<16x32xbf16>, vector<32x64xbf16>, vector<16x64xf32> -> vector<16x64xf32>
    %121 = vector.broadcast %16 : vector<1x64xf32> to vector<16x64xf32>
    %122 = arith.addf %120, %121 : vector<16x64xf32>
    %cst_46 = arith.constant 5.000000e-01 : f32
    %123 = vector.broadcast %cst_46 : f32 to vector<16x64xf32>
    %124 = arith.mulf %123, %122 : vector<16x64xf32>
    %cst_47 = arith.constant 0.707106769 : f32
    %125 = vector.broadcast %cst_47 : f32 to vector<16x64xf32>
    %126 = arith.mulf %122, %125 : vector<16x64xf32>
    %127 = math.absf %126 : vector<16x64xf32>
    %cst_48 = arith.constant 0.327591091 : f32
    %128 = vector.broadcast %cst_48 : f32 to vector<16x64xf32>
    %129 = arith.mulf %128, %127 : vector<16x64xf32>
    %cst_49 = arith.constant 1.000000e+00 : f32
    %130 = vector.broadcast %cst_49 : f32 to vector<16x64xf32>
    %131 = arith.addf %130, %129 : vector<16x64xf32>
    %cst_50 = arith.constant 1.000000e+00 : f32
    %132 = vector.broadcast %cst_50 : f32 to vector<16x64xf32>
    %133 = arith.divf %132, %131 : vector<16x64xf32>
    %cst_51 = arith.constant 1.06140542 : f32
    %134 = vector.broadcast %cst_51 : f32 to vector<16x64xf32>
    %135 = arith.mulf %134, %133 : vector<16x64xf32>
    %cst_52 = arith.constant -1.45315206 : f32
    %136 = vector.broadcast %cst_52 : f32 to vector<16x64xf32>
    %137 = arith.addf %135, %136 : vector<16x64xf32>
    %138 = arith.mulf %137, %133 : vector<16x64xf32>
    %cst_53 = arith.constant 1.42141378 : f32
    %139 = vector.broadcast %cst_53 : f32 to vector<16x64xf32>
    %140 = arith.addf %138, %139 : vector<16x64xf32>
    %141 = arith.mulf %140, %133 : vector<16x64xf32>
    %cst_54 = arith.constant -0.284496725 : f32
    %142 = vector.broadcast %cst_54 : f32 to vector<16x64xf32>
    %143 = arith.addf %141, %142 : vector<16x64xf32>
    %144 = arith.mulf %143, %133 : vector<16x64xf32>
    %cst_55 = arith.constant 0.254829586 : f32
    %145 = vector.broadcast %cst_55 : f32 to vector<16x64xf32>
    %146 = arith.addf %144, %145 : vector<16x64xf32>
    %147 = arith.mulf %146, %133 : vector<16x64xf32>
    %cst_56 = arith.constant 0.000000e+00 : f32
    %148 = vector.broadcast %cst_56 : f32 to vector<16x64xf32>
    %149 = arith.subf %148, %127 : vector<16x64xf32>
    %150 = arith.mulf %149, %127 : vector<16x64xf32>
    %151 = math.exp %150 : vector<16x64xf32>
    %152 = arith.mulf %147, %151 : vector<16x64xf32>
    %cst_57 = arith.constant 1.000000e+00 : f32
    %153 = vector.broadcast %cst_57 : f32 to vector<16x64xf32>
    %154 = arith.subf %153, %152 : vector<16x64xf32>
    %cst_58 = arith.constant 0.000000e+00 : f32
    %155 = vector.broadcast %cst_58 : f32 to vector<16x64xf32>
    %156 = arith.cmpf oge, %126, %155 : vector<16x64xf32>
    %cst_59 = arith.constant 0.000000e+00 : f32
    %157 = vector.broadcast %cst_59 : f32 to vector<16x64xf32>
    %158 = arith.subf %157, %154 : vector<16x64xf32>
    %159 = arith.select %156, %154, %158 : vector<16x64xi1>, vector<16x64xf32>
    %cst_60 = arith.constant 1.000000e+00 : f32
    %160 = vector.broadcast %cst_60 : f32 to vector<16x64xf32>
    %161 = arith.addf %160, %159 : vector<16x64xf32>
    %162 = arith.mulf %124, %161 : vector<16x64xf32>
    %163 = arith.truncf %162 : vector<16x64xf32> to vector<16x64xbf16>
    %cst_61 = arith.constant dense<0.000000e+00> : vector<16x32xf32>
    %164 = tpu.matmul %163, %6, %cst_61 {dimension_numbers = #tpu.dot_dimension_numbers<[1], [0], [0], [1], [0, 0, 1, 1], [], []>} : vector<16x64xbf16>, vector<64x32xbf16>, vector<16x32xf32> -> vector<16x32xf32>
    %165 = vector.broadcast %17 : vector<1x32xf32> to vector<16x32xf32>
    %166 = arith.addf %164, %165 : vector<16x32xf32>
    %167 = arith.addf %166, %118 : vector<16x32xf32>
    %cst_62 = arith.constant dense<0.000000e+00> : vector<16xf32>
    %168 = vector.multi_reduction <add>, %167, %cst_62 [1] : vector<16x32xf32> to vector<16xf32>
    %169 = vector.shape_cast %168 : vector<16xf32> to vector<16x1xf32>
    %cst_63 = arith.constant 3.200000e+01 : f32
    %170 = vector.broadcast %cst_63 : f32 to vector<16x1xf32>
    %171 = arith.divf %169, %170 : vector<16x1xf32>
    %172 = vector.broadcast %171 : vector<16x1xf32> to vector<16x32xf32>
    %173 = arith.subf %167, %172 : vector<16x32xf32>
    %174 = arith.mulf %173, %173 : vector<16x32xf32>
    %cst_64 = arith.constant dense<0.000000e+00> : vector<16xf32>
    %175 = vector.multi_reduction <add>, %174, %cst_64 [1] : vector<16x32xf32> to vector<16xf32>
    %176 = vector.shape_cast %175 : vector<16xf32> to vector<16x1xf32>
    %cst_65 = arith.constant 3.200000e+01 : f32
    %177 = vector.broadcast %cst_65 : f32 to vector<16x1xf32>
    %178 = arith.divf %176, %177 : vector<16x1xf32>
    %179 = vector.broadcast %171 : vector<16x1xf32> to vector<16x32xf32>
    %180 = arith.subf %167, %179 : vector<16x32xf32>
    %cst_66 = arith.constant 9.99999996E-13 : f32
    %181 = vector.broadcast %cst_66 : f32 to vector<16x1xf32>
    %182 = arith.addf %178, %181 : vector<16x1xf32>
    %183 = math.rsqrt %182 : vector<16x1xf32>
    %184 = vector.broadcast %183 : vector<16x1xf32> to vector<16x32xf32>
    %185 = arith.mulf %180, %184 : vector<16x32xf32>
    %186 = vector.broadcast %18 : vector<1x32xf32> to vector<16x32xf32>
    %187 = arith.mulf %185, %186 : vector<16x32xf32>
    %188 = vector.broadcast %19 : vector<1x32xf32> to vector<16x32xf32>
    %189 = arith.addf %187, %188 : vector<16x32xf32>
    %c0_67 = arith.constant 0 : index
    %c0_68 = arith.constant 0 : index
    %190 = vector.load %arg4[%c0_67, %c0_68] : memref<16x32xf32, #tpu.memory_space<vmem>>, vector<16x32xf32>
    tpu.vector_store %arg4[%c0_67, %c0_68], %189 {strides = array<i32>} : memref<16x32xf32, #tpu.memory_space<vmem>>, vector<16x32xf32>,
    return
  }
}

</mosaic_0001>

<bundles_post_ra>
// kernel: base_model_forward.1
= control target key start
LH: loop header
LB: loop body
LE: loop exit
PB: predicated region body
PF: predicated region fallthrough
CT: control target
= control target key end

     0   :  { %9 = vsyncpa [#allocation3], 0  ;;  %s1290_s0 = inlined_call_operand.vmem [shape: s32[16,1], index: 0, kind: input, shape index: {}]   ;;  %s1291_s1 = inlined_call_operand.vmem [shape: f32[1,32], index: 1, kind: input, shape index: {}]   ;;  %s1292_s2 = inlined_call_operand.hbm [shape: bf16[352,128], index: 2, kind: input, shape index: {}]   ;;  %s1293_s3 = inlined_call_operand.hbm [shape: f32[96,128], index: 3, kind: input, shape index: {}]   ;;  %s1294_s4 = inlined_call_operand.hbm [shape: f32[16,32], index: 4, kind: output, shape index: {}]  }
   0x1   :  { %10 = vsyncpa [#allocation6], 0 }
   0x2   :  { %11 = vsyncpa [#allocation4], 0  ;;  %s20_s17 = sshll.u32 %s1292_s2, 4  ;;  %s1119_s18 = smov [#allocation2]   ;;  %s21_s17 = int_to_ptr.hbm [resolvable:$true] %s20_s17 }
   0x3   :  { %s22_s19 = sshll.u32 %s1119_s18, 4  ;;  %s33_s22 = sshll.u32 %s1293_s3, 4  ;;  %s23_s19 = int_to_ptr.vmem [resolvable:$true] %s22_s19  ;;  %s34_s22 = int_to_ptr.hbm [resolvable:$true] %s33_s22 }
   0x4   :  { %s1120_s23 = smov 64   ;;  %s1121_s24 = smov 4  }
   0x5   :  { %28 = dma.hbm_to_vmem [thread:$0]  %s21_s17, 2816, %s23_s19, [#allocation3], %s1120_s23, %s1120_s23, %s1121_s24  }
   0x6   :  { %s1122_s25 = smov [#allocation5]   ;;  %s1123_s27 = smov 128  }
   0x7   :  { %s35_s26 = sshll.u32 %s1122_s25, 4  ;;  %s1124_s28 = smov 8   ;;  %s36_s26 = int_to_ptr.vmem [resolvable:$true] %s35_s26 }
   0x8   :  { %41 = dma.hbm_to_vmem [thread:$0]  %s34_s22, 1536, %s36_s26, [#allocation6], %s1123_s27, %s1123_s27, %s1124_s28  }
   0x9   :  { %1113 = dma.done.wait [#allocation3], 2816  }
   0xa   :  { %1114 = vsyncadd [#allocation3], 4294964480 }
   0xb   :  { %1115 = dma.done.wait [#allocation6], 1536  }
   0xc   :  { %1116 = vsyncadd [#allocation6], 4294965760  ;;  %v1125_v0 = vmov 0   ;;  %v117_v1 = vld [vmem:[%s1290_s0] sm:$0xff]  ;;  %v118_v2 = vld [vmem:[%s1290_s0 + $0x8] sm:$0xff]  ;;  %v127_v16 = vlaneseq  ;;  %vm204_vm7 = vcmask 261120  }
   0xd   :  { %989 = vset.pattern.permute.xlu0 %v1125_v0  ;;  %v964_v3 = vld [vmem:[#allocation2 + $0x38] sm:$0xff]  ;;  %vm119_vm0 = vcmp.gt.s32.totalorder %v117_v1, 0  ;;  %vm121_vm1 = vcmp.gt.s32.totalorder %v118_v2, 0  ;;  %v963_v5 = vld [vmem:[#allocation2 + $0x30] sm:$0xff]  ;;  %v962_v8 = vld [vmem:[#allocation2 + $0x28] sm:$0xff]  ;;  %v1127_v28 = vmov 32.0  }
   0xe   :  { %v120_v4 = vsel %vm119_vm0, %v117_v1, 0  ;;  %190 = vmatpush.bf16.msra.mxu0 %v964_v3  ;;  %v122_v7 = vsel %vm121_vm1, %v118_v2, 0  ;;  %v961_v10 = vld [vmem:[#allocation2 + $0x20] sm:$0xff]  ;;  %v960_v11 = vld [vmem:[#allocation2 + $0x18] sm:$0xff]  ;;  %v959_v12 = vld [vmem:[#allocation2 + $0x10] sm:$0xff]  ;;  %v128_v17 = vand.u32 127, %v127_v16  ;;  %1003 = vrcp.f32 %v1127_v28 }
   0xf   :  { %vm123_vm2 = vcmp.lt.s32.totalorder %v120_v4, 127  ;;  %vm125_vm3 = vcmp.lt.s32.totalorder %v122_v7, 127  ;;  %v958_v13 = vld [vmem:[#allocation2 + $0x8] sm:$0xff]  ;;  %v957_v14 = vld [vmem:[#allocation2] sm:$0xff]  ;;  %v1126_v19 = vmov 1.0|1.0  }
  0x10   :  { %v124_v6 = vsel %vm123_vm2, %v120_v4, 127  ;;  %v126_v9 = vsel %vm125_vm3, %v122_v7, 127  ;;  %v95_v20 = vld [vmem:[#allocation5] sm:$0xff]  ;;  %v96_v24 = vld [vmem:[#allocation5 + $0x8] sm:$0xff]  ;;  %v966_v45 = vld [vmem:[#allocation2 + $0x48] sm:$0xff]  ;;  %s838_s9 = sshll.u32 %s1294_s4, 4  ;;  %s839_s9 = int_to_ptr.hbm [resolvable:$true] %s838_s9 }
  0x11   :  { %130 = vperm.xlu0 %989, %v124_v6   ;;  %v968_v46 = vld [vmem:[#allocation2 + $0x58] sm:$0xff]  ;;  %v970_v47 = vld [vmem:[#allocation2 + $0x68] sm:$0xff]  ;;  %285 = vmatpush.bf16.msra.mxu1 %v966_v45  ;;  %v965_v50 = vld [vmem:[#allocation2 + $0x40] sm:$0xff] }
  0x12   :  { %191 = vmatpush.bf16.msra.mxu0 %v963_v5  ;;  %317 = vmatpush.bf16.msra.mxu2 %v968_v46  ;;  %v967_v51 = vld [vmem:[#allocation2 + $0x50] sm:$0xff]  ;;  %v969_v52 = vld [vmem:[#allocation2 + $0x60] sm:$0xff] }
  0x13   :  { %349 = vmatpush.bf16.msra.mxu3 %v970_v47  ;;  %v990_v5 = vld [vmem:[#allocation5 + $0x10] ss:$0 sm:$0xff]  ;;  %v1195_v47 = vld [vmem:[#allocation5 + $0x20] sm:$0xff] }
  0x14   :  { %v1004_v29 = vpop.eup %1003 }
  0x15   :  { %v212_v30 = vmul.f32 32.0, %v1004_v29  ;;  %vm216_vm8 = vweird.f32 %v1004_v29  ;;  %286 = vmatpush.bf16.msra.mxu1 %v965_v50 }
  0x16   :  { %192 = vmatpush.bf16.msra.mxu0 %v962_v8  ;;  %318 = vmatpush.bf16.msra.mxu2 %v967_v51 }
  0x17   :  { %v213_v31 = vsub.f32 1.0, %v212_v30  ;;  %350 = vmatpush.bf16.msra.mxu3 %v969_v52 }
  0x19   :  { %133 = vperm.xlu0 %989, %v126_v9   ;;  %v214_v32 = vmul.f32 %v1004_v29, %v213_v31  ;;  %v991_v9 = vld [vmem:[#allocation5 + $0x11] ss:$0 sm:$0xff] }
  0x1a   :  { %193 = vmatpush.bf16.msra.mxu0 %v961_v10 }
  0x1b   :  { %v215_v33 = vadd.f32 %v1004_v29, %v214_v32 }
  0x1d   :  { %v1171_v34 = vsel %vm216_vm8, %v1004_v29, %v215_v33 }
  0x1e   :  { %194 = vmatpush.bf16.msra.mxu0 %v960_v11 }
  0x22   :  { %195 = vmatpush.bf16.msra.mxu0 %v959_v12 }
  0x26   :  { %196 = vmatpush.bf16.msra.mxu0 %v958_v13 }
  0x2a   :  { %197 = vmatpush.bf16.msra.mxu0 %v957_v14 }
  0x83   :  { %v131_v15 = vpop.permute.xlu0 %130 }
  0x84   :  { %vm135_vm4 = vcmp.eq.s32.totalorder %v128_v17, %v131_v15 }
  0x8b   :  { %v134_v18 = vpop.permute.xlu0 %133 }
  0x8c   :  { %vm136_vm5 = vcmp.eq.s32.totalorder %v128_v17, %v134_v18 }
  0x8d   :  { %vm886_vm6 = vmpackc.low %vm136_vm5, %vm135_vm4 }
  0x8e   :  { %887 = vmatmul.msk.bf16.vlgmr.msra.gmra.mxu0 %vm886_vm6, %v1126_v19 }
 0x10b   :  { %v199_v21 = vpop.f32.mrf.mxu0 }
 0x10c   :  { %v200_v22 = vadd.f32 %v199_v21, %v95_v20 }
 0x10e   :  { %v205_v23 = vsel %vm204_vm7, %v200_v22, 0.0 }
 0x10f   :  { %206 = vadd.xlane.f32.xlu1 %v205_v23  ;;  %v993_v23 = vld [vmem:[#allocation5 + $0x13] ss:$0 sm:$0xff] }
 0x113   :  { %v201_v25 = vpop.f32.mrf.mxu0 }
 0x114   :  { %v202_v26 = vadd.f32 %v201_v25, %v96_v24  ;;  %v994_v24 = vld [vmem:[#allocation5 + $0x14] ss:$0 sm:$0xff] }
 0x116   :  { %v208_v27 = vsel %vm204_vm7, %v202_v26, 0.0 }
 0x117   :  { %209 = vadd.xlane.f32.xlu1 %v208_v27 }
 0x182   :  { %v207_v35 = vpop.xlane.xlu1 %206 }
 0x183   :  { %v218_v36 = vmul.f32 %v1171_v34, %v207_v35 }
 0x185   :  { %v220_v37 = vsub.f32 %v200_v22, %v218_v36 }
 0x187   :  { %v222_v38 = vmul.f32 %v220_v37, %v220_v37 }
 0x189   :  { %v224_v39 = vsel %vm204_vm7, %v222_v38, 0.0 }
 0x18a   :  { %225 = vadd.xlane.f32.xlu2 %v224_v39  ;;  %v210_v40 = vpop.xlane.xlu1 %209 }
 0x18b   :  { %v219_v41 = vmul.f32 %v1171_v34, %v210_v40 }
 0x18d   :  { %v221_v42 = vsub.f32 %v202_v26, %v219_v41  ;;  %v992_v41 = vld [vmem:[#allocation5 + $0x12] ss:$0 sm:$0xff] }
 0x18f   :  { %v223_v43 = vmul.f32 %v221_v42, %v221_v42 }
 0x191   :  { %v227_v44 = vsel %vm204_vm7, %v223_v43, 0.0 }
 0x192   :  { %228 = vadd.xlane.f32.xlu2 %v227_v44  ;;  %v1192_v44 = vld [vmem:[#allocation5 + $0x28] sm:$0xff] }
 0x1fd   :  { %v226_v48 = vpop.xlane.xlu2 %225 }
 0x1fe   :  { %v230_v49 = vmul.f32 %v226_v48, %v1171_v34 }
 0x200   :  { %v232_v53 = vadd.f32 1e-12, %v230_v49 }
 0x202   :  { %1005 = vrsqrt.f32 %v232_v53  ;;  %vm240_vm10 = vweird.f32 %v232_v53 }
 0x205   :  { %v229_v54 = vpop.xlane.xlu2 %228 }
 0x206   :  { %v231_v55 = vmul.f32 %v229_v54, %v1171_v34  ;;  %v1200_v54 = vld [vmem:[#allocation5 + $0x38] sm:$0xff] }
 0x208   :  { %v1006_v56 = vpop.eup %1005  ;;  %v233_v57 = vadd.f32 1e-12, %v231_v55 }
 0x209   :  { %v235_v58 = vmul.f32 %v1006_v56, %v232_v53  ;;  %vm241_vm9 = vweird.f32 %v1006_v56 }
 0x20a   :  { %1007 = vrsqrt.f32 %v233_v57  ;;  %vm242_vm11 = vmor %vm240_vm10, %vm241_vm9  ;;  %vm250_vm13 = vweird.f32 %v233_v57 }
 0x20b   :  { %v236_v59 = vmul.f32 %v1006_v56, %v235_v58 }
 0x20d   :  { %v237_v60 = vmul.f32 0.5, %v236_v59 }
 0x20f   :  { %v238_v61 = vsub.f32 1.5, %v237_v60  ;;  %v113_v60 = vld [vmem:[#allocation5 + $0x40] sm:$0xff] }
 0x210   :  { %v1008_v62 = vpop.eup %1007 }
 0x211   :  { %v239_v63 = vmul.f32 %v1006_v56, %v238_v61  ;;  %v245_v0 = vmul.f32 %v1008_v62, %v233_v57  ;;  %vm251_vm12 = vweird.f32 %v1008_v62  ;;  %v995_v61 = vld [vmem:[%s1291_s1] ss:$0 sm:$0xff]  ;;  %s1128_s1 = smov [#allocation7]  }
 0x212   :  { %vm252_vm14 = vmor %vm250_vm13, %vm251_vm12  ;;  %s836_s6 = sshll.u32 %s1128_s1, 4  ;;  %s837_s6 = int_to_ptr.vmem [resolvable:$true] %s836_s6 }
 0x213   :  { %v246_v1 = vmul.f32 %v1008_v62, %v245_v0  ;;  %v243_v2 = vsel %vm242_vm11, %v1006_v56, %v239_v63  ;;  %v1202_v56 = vld [vmem:[#allocation5 + $0x30] sm:$0xff] }
 0x214   :  { %v254_v6 = vmul.f32 %v243_v2, %v220_v37  ;;  %v114_v2 = vld [vmem:[#allocation5 + $0x48] sm:$0xff] }
 0x215   :  { %v247_v3 = vmul.f32 0.5, %v246_v1 }
 0x216   :  { %v257_v10 = vmul.f32 %v990_v5, %v254_v6 }
 0x217   :  { %v248_v4 = vsub.f32 1.5, %v247_v3 }
 0x218   :  { %v1179_v13 = vadd.f32 %v991_v9, %v257_v10 }
 0x219   :  { %v249_v7 = vmul.f32 %v1008_v62, %v248_v4 }
 0x21b   :  { %v253_v8 = vsel %vm252_vm14, %v1008_v62, %v249_v7  ;;  %v115_v7 = vld [vmem:[#allocation5 + $0x50] sm:$0xff] }
 0x21c   :  { %v255_v11 = vmul.f32 %v253_v8, %v221_v42 }
 0x21e   :  { %v258_v12 = vmul.f32 %v990_v5, %v255_v11 }
 0x220   :  { %v1181_v14 = vadd.f32 %v991_v9, %v258_v12  ;;  %v116_v12 = vld [vmem:[#allocation5 + $0x58] sm:$0xff] }
 0x222   :  { %v262_v15 = vpack.c.bf16 %v1181_v14, %v1179_v13 }
 0x224   :  { %896 = vmatmul.msk.bf16.vlgmr.msra.gmra.mxu1 %vm204_vm7, %v262_v15  ;;  %906 = vmatmul.msk.bf16.vlgmr.msra.gmra.mxu2 %vm204_vm7, %v262_v15 }
 0x225   :  { %916 = vmatmul.msk.bf16.vlgmr.msra.gmra.mxu3 %vm204_vm7, %v262_v15 }
 0x234   :  { %897 = vmatmul.msk.bf16.gmra.mxu1 %vm204_vm7, %v262_v15  ;;  %907 = vmatmul.msk.bf16.gmra.mxu2 %vm204_vm7, %v262_v15 }
 0x235   :  { %917 = vmatmul.msk.bf16.gmra.mxu3 %vm204_vm7, %v262_v15 }
 0x2a1   :  { %v288_v22 = vpop.f32.mrf.mxu1 }
 0x2a2   :  { %v289_v45 = vadd.f32 %v992_v41, %v288_v22 }
 0x2a4   :  { %v362_v50 = vmul.f32 %v289_v45, %v1195_v47 }
 0x2a7   :  { %v320_v16 = vpop.f32.mrf.mxu2 }
 0x2a8   :  { %v352_v17 = vpop.f32.mrf.mxu3  ;;  %v321_v39 = vadd.f32 %v993_v23, %v320_v16 }
 0x2a9   :  { %v290_v32 = vpop.f32.mrf.mxu1  ;;  %v353_v38 = vadd.f32 %v994_v24, %v352_v17 }
 0x2aa   :  { %v291_v43 = vadd.f32 %v992_v41, %v290_v32 }
 0x2ac   :  { %v363_v49 = vmul.f32 %v291_v43, %v1192_v44 }
 0x2ae   :  { %v366_v51 = vpack.c.bf16 %v363_v49, %v362_v50 }
 0x2af   :  { %v322_v18 = vpop.f32.mrf.mxu2 }
 0x2b0   :  { %v354_v19 = vpop.f32.mrf.mxu3  ;;  %v323_v36 = vadd.f32 %v993_v23, %v322_v18 }
 0x2b1   :  { %v355_v33 = vadd.f32 %v994_v24, %v354_v19  ;;  %v293_v48 = vpop.f32.mrf.mxu1 }
 0x2b2   :  { %v368_v42 = vpack.c.bf16 %v323_v36, %v321_v39  ;;  %v294_v55 = vadd.f32 %v992_v41, %v293_v48 }
 0x2b3   :  { %v507_v40 = vpack.c.bf16 %v355_v33, %v353_v38 }
 0x2b4   :  { %v377_v46 = vsel %vm204_vm7, %v368_v42, 0  ;;  %v364_v58 = vmul.f32 %v294_v55, %v1202_v56 }
 0x2b7   :  { %v325_v20 = vpop.f32.mrf.mxu2 }
 0x2b8   :  { %v357_v21 = vpop.f32.mrf.mxu3  ;;  %v326_v26 = vadd.f32 %v993_v23, %v325_v20 }
 0x2b9   :  { %v358_v29 = vadd.f32 %v994_v24, %v357_v21  ;;  %v295_v52 = vpop.f32.mrf.mxu1 }
 0x2ba   :  { %v296_v53 = vadd.f32 %v992_v41, %v295_v52 }
 0x2bc   :  { %v365_v57 = vmul.f32 %v296_v53, %v1200_v54 }
 0x2be   :  { %v367_v59 = vpack.c.bf16 %v365_v57, %v364_v58 }
 0x2bf   :  { %v327_v25 = vpop.f32.mrf.mxu2 }
 0x2c0   :  { %v328_v27 = vadd.f32 %v993_v23, %v327_v25  ;;  %v359_v28 = vpop.f32.mrf.mxu3 }
 0x2c1   :  { %v360_v30 = vadd.f32 %v994_v24, %v359_v28 }
 0x2c2   :  { %v369_v31 = vpack.c.bf16 %v328_v27, %v326_v26 }
 0x2c3   :  { %v508_v35 = vpack.c.bf16 %v360_v30, %v358_v29 }
 0x2c4   :  { %v380_v37 = vsel %vm204_vm7, %v369_v31, 0 }
 0x2c5   :  { %521 = vmatpush.bf16.msrb.mxu2 %v508_v35  ;;  %388 = vmatpush.bf16.xpose.msrb.mxu1 %v380_v37 }
 0x2c9   :  { %522 = vmatpush.bf16.msrb.mxu2 %v507_v40 }
 0x2cd   :  { %389 = vmatpush.bf16.xpose.msrb.mxu1 %v377_v46 }
 0x2d4   :  { %918 = vmatmul.msk.bf16.vlgmr.msrb.gmra.mxu1 %vm204_vm7, %v366_v51 }
 0x2e4   :  { %919 = vmatmul.msk.bf16.gmra.mxu1 %vm204_vm7, %v367_v59 }
 0x351   :  { %v391_v62 = vpop.f32.mrf.mxu1 }
 0x352   :  { %v392_v63 = vadd.f32 %v391_v62, %v113_v60 }
 0x354   :  { %v405_v0 = vadd.f32 %v995_v61, %v392_v63 }
 0x356   :  { %v409_v1 = vsel %vm204_vm7, %v405_v0, -inf }
 0x357   :  { %410 = vmax.xlane.f32.xlu0 %v409_v1 }
 0x359   :  { %v393_v3 = vpop.f32.mrf.mxu1 }
 0x35a   :  { %v394_v4 = vadd.f32 %v393_v3, %v114_v2 }
 0x35c   :  { %v406_v5 = vadd.f32 %v995_v61, %v394_v4 }
 0x35e   :  { %v412_v6 = vsel %vm204_vm7, %v406_v5, -inf }
 0x35f   :  { %413 = vmax.xlane.f32.xlu1 %v412_v6 }
 0x361   :  { %v396_v8 = vpop.f32.mrf.mxu1 }
 0x362   :  { %v397_v9 = vadd.f32 %v396_v8, %v115_v7 }
 0x364   :  { %v407_v10 = vadd.f32 %v995_v61, %v397_v9 }
 0x366   :  { %v415_v11 = vsel %vm204_vm7, %v407_v10, -inf }
 0x367   :  { %416 = vmax.xlane.f32.xlu2 %v415_v11 }
 0x369   :  { %v398_v15 = vpop.f32.mrf.mxu1 }
 0x36a   :  { %v399_v16 = vadd.f32 %v398_v15, %v116_v12 }
 0x36c   :  { %v408_v17 = vadd.f32 %v995_v61, %v399_v16 }
 0x36e   :  { %v418_v18 = vsel %vm204_vm7, %v408_v17, -inf }
 0x36f   :  { %419 = vmax.xlane.f32.xlu1 %v418_v18 }
 0x3ca   :  { %v411_v19 = vpop.xlane.xlu0 %410 }
 0x3cb   :  { %v421_v20 = vsub.f32 %v405_v0, %v411_v19 }
 0x3cd   :  { %v425_v21 = vmul.f32 1.442695, %v421_v20 }
 0x3cf   :  { %1009 = vpow2.f32 %v425_v21 }
 0x3d2   :  { %v414_v22 = vpop.xlane.xlu1 %413 }
 0x3d3   :  { %v422_v23 = vsub.f32 %v406_v5, %v414_v22 }
 0x3d5   :  { %v1010_v24 = vpop.eup %1009  ;;  %v427_v25 = vmul.f32 1.442695, %v422_v23 }
 0x3d6   :  { %v433_v26 = vsel %vm204_vm7, %v1010_v24, 0.0 }
 0x3d7   :  { %1011 = vpow2.f32 %v427_v25  ;;  %434 = vadd.xlane.f32.xlu2 %v433_v26 }
 0x3da   :  { %v417_v27 = vpop.xlane.xlu2 %416 }
 0x3db   :  { %v423_v28 = vsub.f32 %v407_v10, %v417_v27 }
 0x3dd   :  { %v1012_v29 = vpop.eup %1011  ;;  %v429_v30 = vmul.f32 1.442695, %v423_v28 }
 0x3de   :  { %v436_v31 = vsel %vm204_vm7, %v1012_v29, 0.0 }
 0x3df   :  { %1013 = vpow2.f32 %v429_v30  ;;  %437 = vadd.xlane.f32.xlu1 %v436_v31 }
 0x3e2   :  { %v420_v32 = vpop.xlane.xlu1 %419 }
 0x3e3   :  { %v424_v33 = vsub.f32 %v408_v17, %v420_v32 }
 0x3e5   :  { %v1216_v35 = vpop.eup %1013  ;;  %v431_v36 = vmul.f32 1.442695, %v424_v33  ;;  %v972_v33 = vld [vmem:[#allocation2 + $0x78] sm:$0xff] }
 0x3e6   :  { %v439_v37 = vsel %vm204_vm7, %v1216_v35, 0.0  ;;  %563 = vmatpush.bf16.msrb.mxu3 %v972_v33  ;;  %v999_v33 = vld [vmem:[#allocation5 + $0x18] ss:$0 sm:$0xff] }
 0x3e7   :  { %1015 = vpow2.f32 %v431_v36  ;;  %440 = vadd.xlane.f32.xlu2 %v439_v37  ;;  %v971_v36 = vld [vmem:[#allocation2 + $0x70] sm:$0xff] }
 0x3ea   :  { %564 = vmatpush.bf16.msrb.mxu3 %v971_v36 }
 0x3ed   :  { %v1220_v38 = vpop.eup %1015 }
 0x3ee   :  { %v442_v39 = vsel %vm204_vm7, %v1220_v38, 0.0 }
 0x3ef   :  { %443 = vadd.xlane.f32.xlu1 %v442_v39 }
 0x44a   :  { %v435_v40 = vpop.xlane.xlu2 %434 }
 0x44b   :  { %1017 = vrcp.f32 %v435_v40  ;;  %v456_v52 = vand.u32 2147483648, %v435_v40  ;;  %vm450_vm0 = vweird.f32 %v435_v40  ;;  %v454_v55 = vand.u32 2147483647, %v435_v40 }
 0x44d   :  { %v457_v62 = vor.u32 1.1754944e-38, %v456_v52  ;;  %vm455_vm4 = vcmp.eq.f32.partialorder %v454_v55, 8.507059e+37 }
 0x451   :  { %v1018_v41 = vpop.eup %1017 }
 0x452   :  { %v446_v42 = vmul.f32 %v1018_v41, %v435_v40  ;;  %v438_v43 = vpop.xlane.xlu1 %437  ;;  %vm451_vm15 = vweird.f32 %v1018_v41 }
 0x453   :  { %1019 = vrcp.f32 %v438_v43  ;;  %vm1224_vm1 = vmor %vm450_vm0, %vm451_vm15  ;;  %v471_v59 = vand.u32 2147483648, %v438_v43  ;;  %v469_v61 = vand.u32 2147483647, %v438_v43  ;;  %vm465_vm3 = vweird.f32 %v438_v43 }
 0x454   :  { %v447_v45 = vsub.f32 1.0, %v446_v42 }
 0x455   :  { %v472_v2 = vor.u32 1.1754944e-38, %v471_v59  ;;  %vm470_vm6 = vcmp.eq.f32.partialorder %v469_v61, 8.507059e+37 }
 0x456   :  { %v448_v46 = vmul.f32 %v1018_v41, %v447_v45 }
 0x458   :  { %v449_v51 = vadd.f32 %v1018_v41, %v448_v46 }
 0x459   :  { %v1020_v48 = vpop.eup %1019 }
 0x45a   :  { %v461_v49 = vmul.f32 %v1020_v48, %v438_v43  ;;  %v441_v50 = vpop.xlane.xlu2 %440  ;;  %vm466_vm2 = vweird.f32 %v1020_v48  ;;  %v453_v60 = vsel %vm1224_vm1, %v1018_v41, %v449_v51 }
 0x45b   :  { %1021 = vrcp.f32 %v441_v50  ;;  %vm467_vm5 = vmor %vm465_vm3, %vm466_vm2  ;;  %v458_v5 = vsel %vm455_vm4, %v457_v62, %v453_v60  ;;  %v486_v17 = vand.u32 2147483648, %v441_v50  ;;  %vm480_vm9 = vweird.f32 %v441_v50 }
 0x45c   :  { %v462_v53 = vsub.f32 1.0, %v461_v49  ;;  %v459_v8 = vmul.f32 %v1010_v24, %v458_v5  ;;  %v484_v18 = vand.u32 2147483647, %v441_v50  ;;  %v996_v49 = vld [vmem:[#allocation5 + $0x15] ss:$0 sm:$0xff] }
 0x45d   :  { %v487_v24 = vor.u32 1.1754944e-38, %v486_v17 }
 0x45e   :  { %v463_v58 = vmul.f32 %v1020_v48, %v462_v53  ;;  %vm485_vm12 = vcmp.eq.f32.partialorder %v484_v18, 8.507059e+37 }
 0x460   :  { %v464_v63 = vadd.f32 %v1020_v48, %v463_v58 }
 0x461   :  { %v1022_v0 = vpop.eup %1021 }
 0x462   :  { %v468_v1 = vsel %vm467_vm5, %v1020_v48, %v464_v63  ;;  %v476_v3 = vmul.f32 %v1022_v0, %v441_v50  ;;  %v444_v4 = vpop.xlane.xlu1 %443  ;;  %vm481_vm8 = vweird.f32 %v1022_v0 }
 0x463   :  { %1023 = vrcp.f32 %v444_v4  ;;  %v473_v7 = vsel %vm470_vm6, %v472_v2, %v468_v1  ;;  %vm482_vm10 = vmor %vm480_vm9, %vm481_vm8  ;;  %v501_v20 = vand.u32 2147483648, %v444_v4  ;;  %v499_v22 = vand.u32 2147483647, %v444_v4  ;;  %v973_v2 = vld [vmem:[#allocation2 + $0x80] sm:$0xff] }
 0x464   :  { %v477_v6 = vsub.f32 1.0, %v476_v3  ;;  %v474_v9 = vmul.f32 %v1012_v29, %v473_v7  ;;  %vm495_vm13 = vweird.f32 %v444_v4 }
 0x465   :  { %v502_v26 = vor.u32 1.1754944e-38, %v501_v20  ;;  %vm500_vm15 = vcmp.eq.f32.partialorder %v499_v22, 8.507059e+37 }
 0x466   :  { %v478_v10 = vmul.f32 %v1022_v0, %v477_v6  ;;  %v505_v11 = vpack.c.bf16 %v474_v9, %v459_v8 }
 0x468   :  { %920 = vmatmul.msk.bf16.vlgmr.msrb.gmra.mxu2 %vm204_vm7, %v505_v11  ;;  %v479_v15 = vadd.f32 %v1022_v0, %v478_v10 }
 0x469   :  { %v1024_v12 = vpop.eup %1023 }
 0x46a   :  { %v491_v16 = vmul.f32 %v1024_v12, %v444_v4  ;;  %vm496_vm11 = vweird.f32 %v1024_v12  ;;  %v483_v23 = vsel %vm482_vm10, %v1022_v0, %v479_v15 }
 0x46b   :  { %vm497_vm14 = vmor %vm495_vm13, %vm496_vm11  ;;  %v488_v27 = vsel %vm485_vm12, %v487_v24, %v483_v23  ;;  %v997_v23 = vld [vmem:[#allocation5 + $0x16] ss:$0 sm:$0xff] }
 0x46c   :  { %v492_v19 = vsub.f32 1.0, %v491_v16  ;;  %v489_v30 = vmul.f32 %v1216_v35, %v488_v27 }
 0x46e   :  { %v493_v21 = vmul.f32 %v1024_v12, %v492_v19 }
 0x470   :  { %v494_v25 = vadd.f32 %v1024_v12, %v493_v21 }
 0x472   :  { %v498_v28 = vsel %vm497_vm14, %v1024_v12, %v494_v25 }
 0x473   :  { %v503_v29 = vsel %vm500_vm15, %v502_v26, %v498_v28  ;;  %v998_v28 = vld [vmem:[#allocation5 + $0x17] ss:$0 sm:$0xff] }
 0x474   :  { %v504_v31 = vmul.f32 %v1220_v38, %v503_v29 }
 0x476   :  { %v506_v32 = vpack.c.bf16 %v504_v31, %v489_v30 }
 0x478   :  { %921 = vmatmul.msk.bf16.gmra.mxu2 %vm204_vm7, %v506_v32 }
 0x4eb   :  { %v524_v37 = vpop.f32.mrf.mxu2 }
 0x4ec   :  { %v534_v43 = vmul.f32 %v524_v37, %v1195_v47 }
 0x4f3   :  { %v526_v39 = vpop.f32.mrf.mxu2 }
 0x4f4   :  { %v535_v45 = vmul.f32 %v526_v39, %v1192_v44 }
 0x4fb   :  { %v529_v40 = vpop.f32.mrf.mxu2 }
 0x4fc   :  { %v536_v41 = vmul.f32 %v529_v40, %v1202_v56 }
 0x4fe   :  { %v538_v38 = vadd.f32 %v536_v41, %v534_v43 }
 0x503   :  { %v531_v42 = vpop.f32.mrf.mxu2 }
 0x504   :  { %v537_v35 = vmul.f32 %v531_v42, %v1200_v54 }
 0x506   :  { %v539_v46 = vadd.f32 %v537_v35, %v535_v45 }
 0x508   :  { %v540_v48 = vpack.c.bf16 %v539_v46, %v538_v38 }
 0x50a   :  { %930 = vmatmul.msk.bf16.vlgmr.msrb.gmra.mxu3 %vm204_vm7, %v540_v48 }
 0x58d   :  { %v566_v50 = vpop.f32.mrf.mxu3 }
 0x58e   :  { %v567_v51 = vadd.f32 %v996_v49, %v566_v50 }
 0x590   :  { %v571_v52 = vadd.f32 %v567_v51, %v1179_v13 }
 0x592   :  { %v573_v53 = vsel %vm204_vm7, %v571_v52, 0.0 }
 0x593   :  { %574 = vadd.xlane.f32.xlu2 %v573_v53 }
 0x595   :  { %v568_v56 = vpop.f32.mrf.mxu3 }
 0x596   :  { %v569_v55 = vadd.f32 %v996_v49, %v568_v56 }
 0x598   :  { %v572_v47 = vadd.f32 %v569_v55, %v1181_v14  ;;  %v974_v14 = vld [vmem:[#allocation2 + $0x88] sm:$0xff] }
 0x599   :  { %646 = vmatpush.bf16.msrb.mxu0 %v974_v14 }
 0x59a   :  { %v576_v44 = vsel %vm204_vm7, %v572_v47, 0.0 }
 0x59b   :  { %577 = vadd.xlane.f32.xlu1 %v576_v44  ;;  %v977_v44 = vld [vmem:[#allocation2 + $0xa0] sm:$0xff] }
 0x59d   :  { %647 = vmatpush.bf16.msrb.mxu0 %v973_v2 }
 0x606   :  { %v575_v54 = vpop.xlane.xlu2 %574 }
 0x607   :  { %v579_v57 = vmul.f32 %v575_v54, %v1171_v34 }
 0x609   :  { %v581_v58 = vsub.f32 %v571_v52, %v579_v57  ;;  %v978_v52 = vld [vmem:[#allocation2 + $0xa8] sm:$0xff] }
 0x60a   :  { %768 = vmatpush.bf16.msra.mxu3 %v978_v52 }
 0x60b   :  { %v583_v59 = vmul.f32 %v581_v58, %v581_v58 }
 0x60d   :  { %v585_v60 = vsel %vm204_vm7, %v583_v59, 0.0 }
 0x60e   :  { %v578_v61 = vpop.xlane.xlu1 %577  ;;  %586 = vadd.xlane.f32.xlu2 %v585_v60  ;;  %769 = vmatpush.bf16.msra.mxu3 %v977_v44  ;;  %v1000_v44 = vld [vmem:[#allocation5 + $0x19] ss:$0 sm:$0xff] }
 0x60f   :  { %v580_v13 = vmul.f32 %v578_v61, %v1171_v34 }
 0x611   :  { %v582_v62 = vsub.f32 %v572_v47, %v580_v13 }
 0x613   :  { %v584_v63 = vmul.f32 %v582_v62, %v582_v62 }
 0x615   :  { %v588_v0 = vsel %vm204_vm7, %v584_v63, 0.0 }
 0x616   :  { %589 = vadd.xlane.f32.xlu1 %v588_v0 }
 0x681   :  { %v587_v1 = vpop.xlane.xlu2 %586 }
 0x682   :  { %v591_v3 = vmul.f32 %v587_v1, %v1171_v34 }
 0x684   :  { %v593_v4 = vadd.f32 1e-12, %v591_v3 }
 0x686   :  { %1025 = vrsqrt.f32 %v593_v4  ;;  %vm601_vm1 = vweird.f32 %v593_v4 }
 0x689   :  { %v590_v5 = vpop.xlane.xlu1 %589 }
 0x68a   :  { %v592_v6 = vmul.f32 %v590_v5, %v1171_v34  ;;  %v975_v5 = vld [vmem:[#allocation2 + $0x90] sm:$0xff] }
 0x68c   :  { %v1026_v7 = vpop.eup %1025  ;;  %v594_v8 = vadd.f32 1e-12, %v592_v6 }
 0x68d   :  { %v596_v9 = vmul.f32 %v1026_v7, %v593_v4  ;;  %vm602_vm0 = vweird.f32 %v1026_v7 }
 0x68e   :  { %1027 = vrsqrt.f32 %v594_v8  ;;  %vm603_vm2 = vmor %vm601_vm1, %vm602_vm0  ;;  %vm611_vm4 = vweird.f32 %v594_v8  ;;  %vm760_vm1 = vcmask 523264  }
 0x68f   :  { %v597_v10 = vmul.f32 %v1026_v7, %v596_v9 }
 0x691   :  { %v598_v11 = vmul.f32 0.5, %v597_v10 }
 0x693   :  { %v599_v12 = vsub.f32 1.5, %v598_v11 }
 0x694   :  { %v1028_v15 = vpop.eup %1027 }
 0x695   :  { %v600_v16 = vmul.f32 %v1026_v7, %v599_v12  ;;  %v606_v17 = vmul.f32 %v1028_v15, %v594_v8  ;;  %vm612_vm3 = vweird.f32 %v1028_v15 }
 0x696   :  { %vm613_vm5 = vmor %vm611_vm4, %vm612_vm3 }
 0x697   :  { %v607_v18 = vmul.f32 %v1028_v15, %v606_v17  ;;  %v604_v19 = vsel %vm603_vm2, %v1026_v7, %v600_v16 }
 0x698   :  { %v615_v22 = vmul.f32 %v604_v19, %v581_v58 }
 0x699   :  { %v608_v20 = vmul.f32 0.5, %v607_v18 }
 0x69a   :  { %v618_v27 = vmul.f32 %v997_v23, %v615_v22 }
 0x69b   :  { %v609_v21 = vsub.f32 1.5, %v608_v20 }
 0x69c   :  { %v1249_v30 = vadd.f32 %v998_v28, %v618_v27 }
 0x69d   :  { %v610_v24 = vmul.f32 %v1028_v15, %v609_v21 }
 0x69f   :  { %v614_v25 = vsel %vm613_vm5, %v1028_v15, %v610_v24 }
 0x6a0   :  { %v616_v26 = vmul.f32 %v614_v25, %v582_v62  ;;  %v976_v62 = vld [vmem:[#allocation2 + $0x98] sm:$0xff] }
 0x6a1   :  { %770 = vmatpush.bf16.msra.mxu3 %v976_v62 }
 0x6a2   :  { %v619_v29 = vmul.f32 %v997_v23, %v616_v26 }
 0x6a4   :  { %v1251_v31 = vadd.f32 %v998_v28, %v619_v29 }
 0x6a5   :  { %771 = vmatpush.bf16.msra.mxu3 %v975_v5 }
 0x6a6   :  { %v623_v32 = vpack.c.bf16 %v1251_v31, %v1249_v30 }
 0x6a8   :  { %939 = vmatmul.msk.bf16.vlgmr.msrb.gmra.mxu0 %vm204_vm7, %v623_v32 }
 0x725   :  { %v649_v36 = vpop.f32.mrf.mxu0 }
 0x726   :  { %v1256_v37 = vadd.f32 %v999_v33, %v649_v36 }
 0x728   :  { %v1259_v39 = vmul.f32 0.70710677, %v1256_v37 }
 0x72a   :  { %v658_v40 = vand.u32 2147483647, %v1259_v39  ;;  %vm724_vm15 = vcmp.ge.f32.partialorder %v1259_v39, 0.0 }
 0x72c   :  { %v660_v41 = vmul.f32 0.3275911, %v658_v40  ;;  %v712_v60 = vsub.f32 0.0, %v658_v40 }
 0x72d   :  { %v651_v42 = vpop.f32.mrf.mxu0 }
 0x72e   :  { %v662_v43 = vadd.f32 1.0, %v660_v41  ;;  %v1262_v45 = vadd.f32 %v999_v33, %v651_v42  ;;  %v714_v1 = vmul.f32 %v712_v60, %v658_v40 }
 0x730   :  { %1029 = vrcp.f32 %v662_v43  ;;  %v1265_v35 = vmul.f32 0.70710677, %v1262_v45  ;;  %v675_v53 = vand.u32 2147483648, %v662_v43  ;;  %v673_v55 = vand.u32 2147483647, %v662_v43 }
 0x731   :  { %vm669_vm8 = vweird.f32 %v662_v43  ;;  %v716_v9 = vmul.f32 1.442695, %v714_v1  ;;  %v655_v52 = vmul.f32 0.5, %v1262_v45 }
 0x732   :  { %v659_v38 = vand.u32 2147483647, %v1265_v35  ;;  %v676_v54 = vor.u32 1.1754944e-38, %v675_v53  ;;  %vm674_vm10 = vcmp.eq.f32.partialorder %v673_v55, 8.507059e+37  ;;  %vm725_vm0 = vcmp.ge.f32.partialorder %v1265_v35, 0.0 }
 0x734   :  { %v661_v46 = vmul.f32 0.3275911, %v659_v38  ;;  %v713_v15 = vsub.f32 0.0, %v659_v38 }
 0x736   :  { %v1030_v48 = vpop.eup %1029  ;;  %v663_v50 = vadd.f32 1.0, %v661_v46  ;;  %v715_v20 = vmul.f32 %v713_v15, %v659_v38 }
 0x737   :  { %v665_v49 = vmul.f32 %v1030_v48, %v662_v43  ;;  %vm670_vm6 = vweird.f32 %v1030_v48 }
 0x738   :  { %1031 = vrcp.f32 %v663_v50  ;;  %vm671_vm9 = vmor %vm669_vm8, %vm670_vm6  ;;  %v690_v14 = vand.u32 2147483648, %v663_v50  ;;  %v688_v3 = vand.u32 2147483647, %v663_v50  ;;  %vm684_vm12 = vweird.f32 %v663_v50 }
 0x739   :  { %v666_v51 = vsub.f32 1.0, %v665_v49  ;;  %1033 = vpow2.f32 %v716_v9  ;;  %v718_v25 = vmul.f32 1.442695, %v715_v20 }
 0x73a   :  { %v691_v8 = vor.u32 1.1754944e-38, %v690_v14  ;;  %vm689_vm14 = vcmp.eq.f32.partialorder %v688_v3, 8.507059e+37 }
 0x73b   :  { %v667_v56 = vmul.f32 %v1030_v48, %v666_v51  ;;  %1035 = vpow2.f32 %v718_v25  ;;  %v654_v51 = vmul.f32 0.5, %v1256_v37 }
 0x73d   :  { %v668_v47 = vadd.f32 %v1030_v48, %v667_v56 }
 0x73e   :  { %v1032_v57 = vpop.eup %1031 }
 0x73f   :  { %v672_v58 = vsel %vm671_vm9, %v1030_v48, %v668_v47  ;;  %v680_v61 = vmul.f32 %v1032_v57, %v663_v50  ;;  %vm685_vm11 = vweird.f32 %v1032_v57  ;;  %v1034_v26 = vpop.eup %1033 }
 0x740   :  { %v677_v59 = vsel %vm674_vm10, %v676_v54, %v672_v58  ;;  %vm686_vm13 = vmor %vm684_vm12, %vm685_vm11 }
 0x741   :  { %v694_v13 = vmul.f32 1.0614054, %v677_v59  ;;  %v681_v63 = vsub.f32 1.0, %v680_v61  ;;  %v1036_v42 = vpop.eup %1035 }
 0x743   :  { %v696_v0 = vadd.f32 -1.4531521, %v694_v13  ;;  %v682_v2 = vmul.f32 %v1032_v57, %v681_v63 }
 0x745   :  { %v698_v4 = vmul.f32 %v696_v0, %v677_v59  ;;  %v683_v6 = vadd.f32 %v1032_v57, %v682_v2 }
 0x747   :  { %v700_v7 = vadd.f32 1.4214138, %v698_v4  ;;  %v687_v10 = vsel %vm686_vm13, %v1032_v57, %v683_v6 }
 0x748   :  { %v692_v12 = vsel %vm689_vm14, %v691_v8, %v687_v10 }
 0x749   :  { %v702_v11 = vmul.f32 %v700_v7, %v677_v59  ;;  %v695_v16 = vmul.f32 1.0614054, %v692_v12 }
 0x74b   :  { %v704_v17 = vadd.f32 -0.28449672, %v702_v11  ;;  %v697_v18 = vadd.f32 -1.4531521, %v695_v16 }
 0x74d   :  { %v706_v19 = vmul.f32 %v704_v17, %v677_v59  ;;  %v699_v21 = vmul.f32 %v697_v18, %v692_v12  ;;  %v1001_v18 = vld [vmem:[#allocation5 + $0x1a] ss:$0 sm:$0xff] }
 0x74f   :  { %v708_v22 = vadd.f32 0.2548296, %v706_v19  ;;  %v701_v23 = vadd.f32 1.4214138, %v699_v21 }
 0x751   :  { %v710_v24 = vmul.f32 %v708_v22, %v677_v59  ;;  %v703_v27 = vmul.f32 %v701_v23, %v692_v12  ;;  %v1002_v22 = vld [vmem:[#allocation5 + $0x1b] ss:$0 sm:$0xff] }
 0x753   :  { %v720_v28 = vmul.f32 %v1034_v26, %v710_v24  ;;  %v705_v29 = vadd.f32 -0.28449672, %v703_v27 }
 0x755   :  { %v722_v32 = vsub.f32 1.0, %v720_v28  ;;  %v707_v33 = vmul.f32 %v705_v29, %v692_v12 }
 0x757   :  { %v709_v36 = vadd.f32 0.2548296, %v707_v33  ;;  %v726_v40 = vsub.f32 0.0, %v722_v32 }
 0x759   :  { %v711_v41 = vmul.f32 %v709_v36, %v692_v12  ;;  %v728_v38 = vsel %vm724_vm15, %v722_v32, %v726_v40 }
 0x75a   :  { %v730_v49 = vadd.f32 1.0, %v728_v38 }
 0x75b   :  { %v721_v43 = vmul.f32 %v1036_v42, %v711_v41 }
 0x75c   :  { %v732_v56 = vmul.f32 %v730_v49, %v654_v51 }
 0x75d   :  { %v723_v46 = vsub.f32 1.0, %v721_v43 }
 0x75f   :  { %v727_v48 = vsub.f32 0.0, %v723_v46 }
 0x761   :  { %v729_v50 = vsel %vm725_vm0, %v723_v46, %v727_v48 }
 0x762   :  { %v731_v53 = vadd.f32 1.0, %v729_v50 }
 0x764   :  { %v733_v55 = vmul.f32 %v731_v53, %v655_v52 }
 0x766   :  { %v734_v47 = vpack.c.bf16 %v733_v55, %v732_v56 }
 0x768   :  { %956 = vmatmul.msk.bf16.vlgmr.msra.gmra.mxu3 %vm760_vm1, %v734_v47 }
 0x7eb   :  { %v773_v54 = vpop.f32.mrf.mxu3 }
 0x7ec   :  { %v774_v39 = vadd.f32 %v1000_v44, %v773_v54 }
 0x7ee   :  { %v778_v57 = vadd.f32 %v774_v39, %v1249_v30 }
 0x7f0   :  { %v780_v58 = vsel %vm204_vm7, %v778_v57, 0.0 }
 0x7f1   :  { %781 = vadd.xlane.f32.xlu2 %v780_v58 }
 0x7f3   :  { %v775_v35 = vpop.f32.mrf.mxu3 }
 0x7f4   :  { %v776_v59 = vadd.f32 %v1000_v44, %v775_v35 }
 0x7f6   :  { %v779_v37 = vadd.f32 %v776_v59, %v1251_v31 }
 0x7f8   :  { %v783_v45 = vsel %vm204_vm7, %v779_v37, 0.0 }
 0x7f9   :  { %784 = vadd.xlane.f32.xlu0 %v783_v45 }
 0x864   :  { %v782_v60 = vpop.xlane.xlu2 %781 }
 0x865   :  { %v786_v61 = vmul.f32 %v782_v60, %v1171_v34 }
 0x867   :  { %v788_v13 = vsub.f32 %v778_v57, %v786_v61 }
 0x869   :  { %v790_v62 = vmul.f32 %v788_v13, %v788_v13 }
 0x86b   :  { %v792_v63 = vsel %vm204_vm7, %v790_v62, 0.0 }
 0x86c   :  { %v785_v0 = vpop.xlane.xlu0 %784  ;;  %793 = vadd.xlane.f32.xlu1 %v792_v63 }
 0x86d   :  { %v787_v30 = vmul.f32 %v785_v0, %v1171_v34 }
 0x86f   :  { %v789_v14 = vsub.f32 %v779_v37, %v787_v30 }
 0x871   :  { %v791_v1 = vmul.f32 %v789_v14, %v789_v14 }
 0x873   :  { %v795_v2 = vsel %vm204_vm7, %v791_v1, 0.0 }
 0x874   :  { %796 = vadd.xlane.f32.xlu2 %v795_v2 }
 0x8df   :  { %v794_v31 = vpop.xlane.xlu1 %793 }
 0x8e0   :  { %v798_v3 = vmul.f32 %v794_v31, %v1171_v34 }
 0x8e2   :  { %v800_v4 = vadd.f32 1e-12, %v798_v3 }
 0x8e4   :  { %1037 = vrsqrt.f32 %v800_v4  ;;  %vm808_vm3 = vweird.f32 %v800_v4 }
 0x8e7   :  { %v797_v5 = vpop.xlane.xlu2 %796 }
 0x8e8   :  { %v799_v6 = vmul.f32 %v797_v5, %v1171_v34 }
 0x8ea   :  { %v1038_v7 = vpop.eup %1037  ;;  %v801_v8 = vadd.f32 1e-12, %v799_v6 }
 0x8eb   :  { %v803_v9 = vmul.f32 %v1038_v7, %v800_v4  ;;  %vm809_vm2 = vweird.f32 %v1038_v7 }
 0x8ec   :  { %1039 = vrsqrt.f32 %v801_v8  ;;  %vm810_vm4 = vmor %vm808_vm3, %vm809_vm2  ;;  %vm818_vm6 = vweird.f32 %v801_v8 }
 0x8ed   :  { %v804_v10 = vmul.f32 %v1038_v7, %v803_v9 }
 0x8ef   :  { %v805_v11 = vmul.f32 0.5, %v804_v10 }
 0x8f1   :  { %v806_v12 = vsub.f32 1.5, %v805_v11 }
 0x8f2   :  { %v1040_v15 = vpop.eup %1039 }
 0x8f3   :  { %v807_v16 = vmul.f32 %v1038_v7, %v806_v12  ;;  %v813_v17 = vmul.f32 %v1040_v15, %v801_v8  ;;  %vm819_vm5 = vweird.f32 %v1040_v15 }
 0x8f4   :  { %vm820_vm8 = vmor %vm818_vm6, %vm819_vm5 }
 0x8f5   :  { %v811_v19 = vsel %vm810_vm4, %v1038_v7, %v807_v16  ;;  %v814_v20 = vmul.f32 %v1040_v15, %v813_v17 }
 0x8f6   :  { %v822_v21 = vmul.f32 %v811_v19, %v788_v13 }
 0x8f7   :  { %v815_v23 = vmul.f32 0.5, %v814_v20 }
 0x8f8   :  { %v825_v34 = vmul.f32 %v1001_v18, %v822_v21 }
 0x8f9   :  { %v816_v24 = vsub.f32 1.5, %v815_v23 }
 0x8fa   :  { %v828_v25 = vadd.f32 %v1002_v22, %v825_v34 }
 0x8fb   :  { %v817_v26 = vmul.f32 %v1040_v15, %v816_v24 }
 0x8fc   :  { %830 = vst.msk [vmem:[#allocation7] sm:$0xff] %vm204_vm7, %v828_v25 }
 0x8fd   :  { %v821_v27 = vsel %vm820_vm8, %v1040_v15, %v817_v26 }
 0x8fe   :  { %v823_v28 = vmul.f32 %v821_v27, %v789_v14 }
 0x900   :  { %v826_v29 = vmul.f32 %v1001_v18, %v823_v28 }
 0x902   :  { %v829_v32 = vadd.f32 %v1002_v22, %v826_v29 }
 0x904   :  { %831 = vst.msk [vmem:[#allocation7 + $0x8] sm:$0xff] %vm204_vm7, %v829_v32 }
 0x905   :  { %844 = dma.vmem_to_hbm [thread:$0]  %s837_s6, 256, %s839_s9, [#allocation4], %s1123_s27, %s1123_s27, %s1124_s28  }
 0x906   :  { %1117 = dma.done.wait [#allocation4], 256  }
 0x907   :  { %1118 = vsyncadd [#allocation4], 4294967040 }
 0x908   :  { %849 = vsyncpa [#allocation3], 1 }
 0x909   :  { %850 = vsyncpa [#allocation6], 1 }
 0x90a   :  { %851 = vsyncpa [#allocation4], 1 }

</bundles_post_ra>
